<compile_context>
chip_gen: v7x
topology: tpu7x:2x2x1
jax: 0.10.0
libtpu: 0.0.40
codegen_flags: <defaults>
</compile_context>

<pallas_src>
import numpy as np
import jax
import jax.numpy as jnp
from jax.experimental import pallas as pl
from jax.experimental.pallas import tpu as pltpu

# ----------------------------- configuration --------------------------------
EMB = 256          # embedding_size
HID = 256          # hidden_states
OUT = 256          # hidden_states_last_layer
BN_EPS = 1e-5
BLK_M = 8          # batch rows per grid step (sublane-aligned)


# ----------------------------- fused kernel ---------------------------------
def projector_kernel(x_ref, w1_ref, b1_ref, w2_ref, b2_ref, w3_ref, o_ref):
    # fc1 (+ folded BN1) + ReLU
    h = jnp.dot(x_ref[...], w1_ref[...], preferred_element_type=jnp.float32)
    h = jnp.maximum(h + b1_ref[...], 0.0)
    # fc2 (+ folded BN2) + ReLU
    h = jnp.dot(h, w2_ref[...], preferred_element_type=jnp.float32)
    h = jnp.maximum(h + b2_ref[...], 0.0)
    # fc3 (no bias)
    o_ref[...] = jnp.dot(h, w3_ref[...],
                         preferred_element_type=jnp.float32).astype(o_ref.dtype)


# ----------------------------- host-side BN folding --------------------------
def fold_bn_into_linear(w, b, gamma, beta, mean, var):
    """y = BN(x @ w.T + b)  ==  x @ w_f + b_f   (inference running-stats BN)."""
    scale = gamma * jax.lax.rsqrt(var + BN_EPS)          # (out,)
    w_f = (w * scale[:, None]).T.astype(jnp.float32)     # (in, out)
    b_f = ((b - mean) * scale + beta).reshape(1, -1).astype(jnp.float32)
    return w_f, b_f


# ----------------------------- forward wrapper --------------------------------
def projector_forward(x, params):
    w1, b1 = fold_bn_into_linear(params["fc1_w"], params["fc1_b"],
                                 params["bn1_g"], params["bn1_b"],
                                 params["bn1_m"], params["bn1_v"])
    w2, b2 = fold_bn_into_linear(params["fc2_w"], params["fc2_b"],
                                 params["bn2_g"], params["bn2_b"],
                                 params["bn2_m"], params["bn2_v"])
    w3 = params["fc3_w"].T.astype(jnp.float32)            # (HID, OUT), bias=False

    B = x.shape[0]
    Bp = ((B + BLK_M - 1) // BLK_M) * BLK_M
    xp = jnp.pad(x.astype(jnp.float32), ((0, Bp - B), (0, 0)))

    out = pl.pallas_call(
        projector_kernel,
        out_shape=jax.ShapeDtypeStruct((Bp, OUT), jnp.float32),
        grid=(Bp // BLK_M,),
        in_specs=[
            pl.BlockSpec((BLK_M, EMB), lambda i: (i, 0)),   # activations (tiled)
            pl.BlockSpec((EMB, HID),   lambda i: (0, 0)),   # w1 (resident)
            pl.BlockSpec((1, HID),     lambda i: (0, 0)),   # b1
            pl.BlockSpec((HID, HID),   lambda i: (0, 0)),   # w2
            pl.BlockSpec((1, HID),     lambda i: (0, 0)),   # b2
            pl.BlockSpec((HID, OUT),   lambda i: (0, 0)),   # w3
        ],
        out_specs=pl.BlockSpec((BLK_M, OUT), lambda i: (i, 0)),
        compiler_params=pltpu.CompilerParams(dimension_semantics=("parallel",)),
    )(xp, w1, b1, w2, b2, w3)
    return out[:B]


# ----------------------------- pure-JAX reference -----------------------------
def projector_reference(x, params):
    def bn(y, g, b, m, v):
        return (y - m) * g * jax.lax.rsqrt(v + BN_EPS) + b

    h = x @ params["fc1_w"].T + params["fc1_b"]
    h = jnp.maximum(bn(h, params["bn1_g"], params["bn1_b"],
                       params["bn1_m"], params["bn1_v"]), 0.0)
    h = h @ params["fc2_w"].T + params["fc2_b"]
    h = jnp.maximum(bn(h, params["bn2_g"], params["bn2_b"],
                       params["bn2_m"], params["bn2_v"]), 0.0)
    return h @ params["fc3_w"].T


# ----------------------------- parameter init --------------------------------
def init_params(key):
    ks = jax.random.split(key, 16)
    p = {}
    p["fc1_w"] = 0.05 * jax.random.normal(ks[0], (HID, EMB), jnp.float32)
    p["fc1_b"] = 0.05 * jax.random.normal(ks[1], (HID,), jnp.float32)
    p["bn1_g"] = 1.0 + 0.1 * jax.random.normal(ks[2], (HID,), jnp.float32)
    p["bn1_b"] = 0.1 * jax.random.normal(ks[3], (HID,), jnp.float32)
    p["bn1_m"] = 0.1 * jax.random.normal(ks[4], (HID,), jnp.float32)
    p["bn1_v"] = 1.0 + 0.1 * jnp.abs(jax.random.normal(ks[5], (HID,), jnp.float32))

    p["fc2_w"] = 0.05 * jax.random.normal(ks[6], (HID, HID), jnp.float32)
    p["fc2_b"] = 0.05 * jax.random.normal(ks[7], (HID,), jnp.float32)
    p["bn2_g"] = 1.0 + 0.1 * jax.random.normal(ks[8], (HID,), jnp.float32)
    p["bn2_b"] = 0.1 * jax.random.normal(ks[9], (HID,), jnp.float32)
    p["bn2_m"] = 0.1 * jax.random.normal(ks[10], (HID,), jnp.float32)
    p["bn2_v"] = 1.0 + 0.1 * jnp.abs(jax.random.normal(ks[11], (HID,), jnp.float32))

    p["fc3_w"] = 0.05 * jax.random.normal(ks[12], (OUT, HID), jnp.float32)
    return p


# ----------------------------- main -------------------------------------------
if __name__ == "__main__":
    key = jax.random.PRNGKey(0)
    kp, kx = jax.random.split(key)
    params = init_params(kp)

    B = 16
    x = jax.random.normal(kx, (B, EMB), dtype=jnp.float32)

    out = jax.block_until_ready(projector_forward(x, params))
    ref = jax.block_until_ready(projector_reference(x, params))

    assert out.shape == (B, OUT)
    assert bool(jnp.all(jnp.isfinite(out)))
    np.testing.assert_allclose(np.asarray(out), np.asarray(ref),
                               rtol=1e-4, atol=1e-4)
    print("KERNEL_OK")
</pallas_src>

<mosaic_0001>
module attributes {stable_mosaic.version = 11 : i64} {
  func.func @projector_kernel(%arg0: i32, %arg1: memref<8x256xf32, #tpu.memory_space<vmem>>, %arg2: memref<256x256xf32, #tpu.memory_space<vmem>>, %arg3: memref<1x256xf32, #tpu.memory_space<vmem>>, %arg4: memref<256x256xf32, #tpu.memory_space<vmem>>, %arg5: memref<1x256xf32, #tpu.memory_space<vmem>>, %arg6: memref<256x256xf32, #tpu.memory_space<vmem>>, %arg7: memref<8x256xf32, #tpu.memory_space<vmem>>) attributes {dimension_semantics = [#tpu.dimension_semantics<parallel>], iteration_bounds = array<i64: 2>, scalar_prefetch = 0 : i64, scratch_operands = 0 : i64, tpu.core_type = #tpu.core_type<tc>, window_params = [{transform_indices = @transform_0, window_bounds = array<i64: 8, 256>}, {pipeline_mode = #tpu.pipeline_mode<synchronous>, transform_indices = @transform_1, window_bounds = array<i64: 256, 256>}, {pipeline_mode = #tpu.pipeline_mode<synchronous>, transform_indices = @transform_2, window_bounds = array<i64: 1, 256>}, {pipeline_mode = #tpu.pipeline_mode<synchronous>, transform_indices = @transform_3, window_bounds = array<i64: 256, 256>}, {pipeline_mode = #tpu.pipeline_mode<synchronous>, transform_indices = @transform_4, window_bounds = array<i64: 1, 256>}, {pipeline_mode = #tpu.pipeline_mode<synchronous>, transform_indices = @transform_5, window_bounds = array<i64: 256, 256>}, {transform_indices = @transform_6, window_bounds = array<i64: 8, 256>}]} {
    %c0 = arith.constant 0 : index
    %c0_0 = arith.constant 0 : index
    %0 = vector.load %arg1[%c0, %c0_0] : memref<8x256xf32, #tpu.memory_space<vmem>>, vector<8x256xf32>
    %c0_1 = arith.constant 0 : index
    %c0_2 = arith.constant 0 : index
    %1 = vector.load %arg2[%c0_1, %c0_2] : memref<256x256xf32, #tpu.memory_space<vmem>>, vector<256x256xf32>
    %cst = arith.constant dense<0.000000e+00> : vector<8x256xf32>
    %2 = tpu.matmul %0, %1, %cst {dimension_numbers = #tpu.dot_dimension_numbers<[1], [0], [0], [1], [0, 0, 1, 1], [], []>} : vector<8x256xf32>, vector<256x256xf32>, vector<8x256xf32> -> vector<8x256xf32>
    %c0_3 = arith.constant 0 : index
    %c0_4 = arith.constant 0 : index
    %3 = vector.load %arg3[%c0_3, %c0_4] : memref<1x256xf32, #tpu.memory_space<vmem>>, vector<1x256xf32>
    %4 = vector.broadcast %3 : vector<1x256xf32> to vector<8x256xf32>
    %5 = arith.addf %2, %4 : vector<8x256xf32>
    %cst_5 = arith.constant 0.000000e+00 : f32
    %6 = vector.broadcast %cst_5 : f32 to vector<8x256xf32>
    %7 = arith.maximumf %5, %6 : vector<8x256xf32>
    %c0_6 = arith.constant 0 : index
    %c0_7 = arith.constant 0 : index
    %8 = vector.load %arg4[%c0_6, %c0_7] : memref<256x256xf32, #tpu.memory_space<vmem>>, vector<256x256xf32>
    %cst_8 = arith.constant dense<0.000000e+00> : vector<8x256xf32>
    %9 = tpu.matmul %7, %8, %cst_8 {dimension_numbers = #tpu.dot_dimension_numbers<[1], [0], [0], [1], [0, 0, 1, 1], [], []>} : vector<8x256xf32>, vector<256x256xf32>, vector<8x256xf32> -> vector<8x256xf32>
    %c0_9 = arith.constant 0 : index
    %c0_10 = arith.constant 0 : index
    %10 = vector.load %arg5[%c0_9, %c0_10] : memref<1x256xf32, #tpu.memory_space<vmem>>, vector<1x256xf32>
    %11 = vector.broadcast %10 : vector<1x256xf32> to vector<8x256xf32>
    %12 = arith.addf %9, %11 : vector<8x256xf32>
    %cst_11 = arith.constant 0.000000e+00 : f32
    %13 = vector.broadcast %cst_11 : f32 to vector<8x256xf32>
    %14 = arith.maximumf %12, %13 : vector<8x256xf32>
    %c0_12 = arith.constant 0 : index
    %c0_13 = arith.constant 0 : index
    %15 = vector.load %arg6[%c0_12, %c0_13] : memref<256x256xf32, #tpu.memory_space<vmem>>, vector<256x256xf32>
    %cst_14 = arith.constant dense<0.000000e+00> : vector<8x256xf32>
    %16 = tpu.matmul %14, %15, %cst_14 {dimension_numbers = #tpu.dot_dimension_numbers<[1], [0], [0], [1], [0, 0, 1, 1], [], []>} : vector<8x256xf32>, vector<256x256xf32>, vector<8x256xf32> -> vector<8x256xf32>
    %c0_15 = arith.constant 0 : index
    %c0_16 = arith.constant 0 : index
    %17 = vector.load %arg7[%c0_15, %c0_16] : memref<8x256xf32, #tpu.memory_space<vmem>>, vector<8x256xf32>
    tpu.vector_store %arg7[%c0_15, %c0_16], %16 {strides = array<i32>} : memref<8x256xf32, #tpu.memory_space<vmem>>, vector<8x256xf32>,
    return
  }
  func.func @transform_0(%arg0: i32) -> (i32, i32) {
    %c0_i32 = arith.constant 0 : i32
    %c0_i32_0 = arith.constant 0 : i32
    return %arg0, %c0_i32 : i32, i32
  }
  func.func @transform_1(%arg0: i32) -> (i32, i32) {
    %c0_i32 = arith.constant 0 : i32
    %c0_i32_0 = arith.constant 0 : i32
    %c0_i32_1 = arith.constant 0 : i32
    return %c0_i32, %c0_i32_0 : i32, i32
  }
  func.func @transform_2(%arg0: i32) -> (i32, i32) {
    %c0_i32 = arith.constant 0 : i32
    %c0_i32_0 = arith.constant 0 : i32
    %c0_i32_1 = arith.constant 0 : i32
    return %c0_i32, %c0_i32_0 : i32, i32
  }
  func.func @transform_3(%arg0: i32) -> (i32, i32) {
    %c0_i32 = arith.constant 0 : i32
    %c0_i32_0 = arith.constant 0 : i32
    %c0_i32_1 = arith.constant 0 : i32
    return %c0_i32, %c0_i32_0 : i32, i32
  }
  func.func @transform_4(%arg0: i32) -> (i32, i32) {
    %c0_i32 = arith.constant 0 : i32
    %c0_i32_0 = arith.constant 0 : i32
    %c0_i32_1 = arith.constant 0 : i32
    return %c0_i32, %c0_i32_0 : i32, i32
  }
  func.func @transform_5(%arg0: i32) -> (i32, i32) {
    %c0_i32 = arith.constant 0 : i32
    %c0_i32_0 = arith.constant 0 : i32
    %c0_i32_1 = arith.constant 0 : i32
    return %c0_i32, %c0_i32_0 : i32, i32
  }
  func.func @transform_6(%arg0: i32) -> (i32, i32) {
    %c0_i32 = arith.constant 0 : i32
    %c0_i32_0 = arith.constant 0 : i32
    return %arg0, %c0_i32 : i32, i32
  }
}

</mosaic_0001>

<bundles_post_ra>
// kernel: tpu_custom_call.1
= control target key start
LH: loop header
LB: loop body
LE: loop exit
PB: predicated region body
PF: predicated region fallthrough
CT: control target
= control target key end

     0   :  { %11 = vsyncpa [#allocation3], 0  ;;  %s1665_s0 = inlined_call_operand.hbm [shape: f32[16,256], index: 0, kind: input, shape index: {}]   ;;  %s1666_s1 = inlined_call_operand.hbm [shape: f32[256,256], index: 1, kind: input, shape index: {}]   ;;  %s1667_s2 = inlined_call_operand.vmem [shape: f32[1,256], index: 2, kind: input, shape index: {}]   ;;  %s1668_s3 = inlined_call_operand.hbm [shape: f32[256,256], index: 3, kind: input, shape index: {}]   ;;  %s1669_s4 = inlined_call_operand.vmem [shape: f32[1,256], index: 4, kind: input, shape index: {}]   ;;  %s1670_s5 = inlined_call_operand.hbm [shape: f32[256,256], index: 5, kind: input, shape index: {}]   ;;  %s1671_s6 = inlined_call_operand.hbm [shape: f32[16,256], index: 6, kind: output, shape index: {}]  }
   0x1   :  { %13 = vsyncpa [#allocation3 + $0x1], 0 }
   0x2   :  { %14 = vsyncpa [#allocation6], 0 }
   0x3   :  { %15 = vsyncpa [#allocation9], 0 }
   0x4   :  { %16 = vsyncpa [#allocation4], 0 }
   0x5   :  { %18 = vsyncpa [#allocation4 + $0x1], 0  ;;  %s1388_s21 = smov 0   ;;  %s1390_s22 = smov 0  }
   0x6   :  { %s1392_s23 = smov 0   ;;  %s1394_s24 = smov 0  }
   0x7 LB: > { %s1409_s25 = sadd.s32 4294967295, %s1344_s24   ;;  %s863_s26 = sadd.s32 4294967294, %s1344_s24   ;;  %s1344_s24 = sphi %s1394_s24, %s1694_s24   ;;  %s1340_s23 = sphi %s1392_s23, %s1693_s23   ;;  %s1336_s22 = sphi %s1390_s22, %s1692_s22   ;;  %s1332_s21 = sphi %s1388_s21, %s1691_s21  }
   0x8   : > { %p44_p0 = scmp.ne.s32.totalorder %s1336_s22, %s1332_s21  ;;  %p1672_p1 = scmp.eq.s32.totalorder %s1409_s25, 0 }
   0x9   : > { %p179_p3 = scmp.eq.s32.totalorder %s863_s26, 1  ;;  %p864_p5 = scmp.ge.s32.totalorder %s1344_s24, 1 }
   0xa   : > { %p1418_p4 = por %p1672_p1, %p44_p0  ;;  %p186_p7 = scmp.lt.s32.totalorder %s1344_s24, 3 }
   0xb   : > { %p1423_p6 = por %p179_p3, %p44_p0  ;;  %s1346_s30 = smov [#allocation5]  }
   0xc   : > { %s1675_s27 = scalar_select %p1418_p4, 1, 0 }
   0xd   : > { %s1676_s28 = scalar_select %p1423_p6, 1, 0 }
   0xe   : > { %p1428_p8 = pnand %p864_p5, %p186_p7  ;;  %s198_s7 = sshll.u32 %s1346_s30, 4  ;;  %s1432_s7 = int_to_ptr.vmem [resolvable:$true] %s198_s7 }
   0xf   : > { %s1347_s9 = smov [#allocation7]   ;;  %s1348_s11 = smov [#allocation8]  }
  0x10   : > { %s1677_s29 = scalar_select %p1428_p8, 1, 0 }
  0x11   : > { %p1093_p9 = pneg %p1428_p8  ;;  %s214_s10 = sshll.u32 %s1347_s9, 4  ;;  %s1443_s10 = int_to_ptr.vmem [resolvable:$true] %s214_s10 }
  0x12   : > { %s1445_s12 = sshll.u32 %s1348_s11, 4  ;;  %s1156_s15 = scalar_lea.hbm %s1666_s1, 8192  ;;  %s231_s12 = int_to_ptr.vmem [resolvable:$true] %s1445_s12 }
  0x13   : > { %p1439_p11 = pnand %p1093_p9, %p1672_p1  ;;  %p1157_p12 = scmp.ne.s32.totalorder %s1666_s1, %s1156_s15 }
  0x14   : > { %p1163_p5 = scmp.lt.u32.totalorder %s1156_s15, %s1666_s1 }
  0x15   : > { %p1455_p13 = pneg %p1439_p11 }
  0x17   : > { %p1159_p0 = pnand %p1455_p13, %p1157_p12 }
  0x19   : > { %p1160_p3 = pneg %p1159_p0 }
  0x1b   : > { %p1165_p7 = pnand %p1163_p5, %p1160_p3 }
  0x1d   : > { %1168 = shalt.err (!%p1165_p7)
}
  0x1e   : > { %s1169_s26 = scalar_lea.vmem %s1432_s7, 8192  ;;  %p1177_p2 = scmp.lt.s32.totalorder %s1432_s7, %s1432_s7 }
  0x1f   : > { %p1170_p9 = scmp.ne.s32.totalorder %s1432_s7, %s1169_s26  ;;  %p1178_p6 = scmp.lt.s32.totalorder %s1169_s26, %s1169_s26 }
  0x21   : > { %p1172_p10 = pnand %p1170_p9, %p1455_p13  ;;  %p1179_p12 = por %p1178_p6, %p1177_p2 }
  0x23   : > { %p1173_p1 = pneg %p1172_p10 }
  0x25   : > { %p1180_p0 = pnand %p1179_p12, %p1173_p1 }
  0x27   : > { %1183 = shalt.err (!%p1180_p0)
}
  0x28   : > { %s1349_s30 = smov 256   ;;  %s1350_s9 = smov 16  }
  0x29   : > { %1096 = dma.hbm_to_vmem [thread:$0]  (!%p1439_p11), %s1666_s1, 8192, %s1432_s7, [#allocation6], %s1349_s30, %s1349_s30, %s1350_s9  }
  0x2a   : > { %s1184_s16 = scalar_lea.hbm %s1668_s3, 8192 }
  0x2b   : > { %p1185_p1 = scmp.ne.s32.totalorder %s1668_s3, %s1184_s16  ;;  %p1191_p10 = scmp.lt.u32.totalorder %s1184_s16, %s1668_s3 }
  0x2d   : > { %p1187_p2 = pnand %p1185_p1, %p1455_p13 }
  0x2f   : > { %p1188_p6 = pneg %p1187_p2 }
  0x31   : > { %p1193_p3 = pnand %p1191_p10, %p1188_p6 }
  0x33   : > { %1196 = shalt.err (!%p1193_p3)
}
  0x34   : > { %s1197_s7 = scalar_lea.vmem %s1443_s10, 8192  ;;  %p1205_p12 = scmp.lt.s32.totalorder %s1443_s10, %s1443_s10 }
  0x35   : > { %p1198_p5 = scmp.ne.s32.totalorder %s1443_s10, %s1197_s7  ;;  %p1206_p0 = scmp.lt.s32.totalorder %s1197_s7, %s1197_s7 }
  0x37   : > { %p1200_p7 = pnand %p1198_p5, %p1455_p13  ;;  %p1207_p1 = por %p1206_p0, %p1205_p12 }
  0x39   : > { %p1201_p9 = pneg %p1200_p7 }
  0x3b   : > { %p1208_p2 = pnand %p1207_p1, %p1201_p9 }
  0x3d   : > { %1211 = shalt.err (!%p1208_p2)
}
  0x3e   : > { %1099 = dma.hbm_to_vmem [thread:$0]  (!%p1439_p11), %s1668_s3, 8192, %s1443_s10, [#allocation6], %s1349_s30, %s1349_s30, %s1350_s9  }
  0x3f   : > { %s1212_s16 = scalar_lea.hbm %s1670_s5, 8192 }
  0x40   : > { %p1213_p6 = scmp.ne.s32.totalorder %s1670_s5, %s1212_s16  ;;  %p1219_p5 = scmp.lt.u32.totalorder %s1212_s16, %s1670_s5 }
  0x42   : > { %p1215_p10 = pnand %p1213_p6, %p1455_p13 }
  0x44   : > { %p1216_p3 = pneg %p1215_p10 }
  0x46   : > { %p1221_p7 = pnand %p1219_p5, %p1216_p3 }
  0x48   : > { %1224 = shalt.err (!%p1221_p7)
}
  0x49   : > { %s1225_s7 = scalar_lea.vmem %s231_s12, 8192  ;;  %p1233_p1 = scmp.lt.s32.totalorder %s231_s12, %s231_s12 }
  0x4a   : > { %p1226_p9 = scmp.ne.s32.totalorder %s231_s12, %s1225_s7  ;;  %p1234_p2 = scmp.lt.s32.totalorder %s1225_s7, %s1225_s7 }
  0x4c   : > { %p1228_p12 = pnand %p1226_p9, %p1455_p13  ;;  %p1235_p4 = por %p1234_p2, %p1233_p1 }
  0x4e   : > { %p1229_p0 = pneg %p1228_p12 }
  0x50   : > { %p1236_p8 = pnand %p1235_p4, %p1229_p0 }
  0x52   : > { %1239 = shalt.err (!%p1236_p8)
}
  0x53   : > { %1102 = dma.hbm_to_vmem [thread:$0]  (!%p1439_p11), %s1670_s5, 8192, %s231_s12, [#allocation9], %s1349_s30, %s1349_s30, %s1350_s9  }
  0x54   : > { %s1528_s18 = sadd.s32 1, %s1344_s24   ;;  %s31_s13 = sadd.s32 1, %s1340_s23 }
  0x55   : > { %s28_s8 = ssub.s32 %s1344_s24, %s1528_s18  ;;  %p38_p8 = scmp.ne.s32.totalorder %s1340_s23, %s1336_s22 }
  0x56   : > { %p29_p4 = scmp.eq.s32.totalorder %s28_s8, 0  ;;  %p39_p13 = scmp.eq.s32.totalorder %s1344_s24, 0 }
  0x57   : > { %p1114_p6 = scmp.lt.s32.totalorder %s1344_s24, 2  ;;  %p1680_p3 = scmp.eq.s32.totalorder %s1409_s25, 1 }
  0x58   : > { %s1538_s14 = scalar_select %p29_p4, %s1340_s23, %s31_s13  }
  0x59   : > { %p40_p10 = por %p39_p13, %p38_p8  ;;  %p1542_p5 = por %p1680_p3, %p38_p8 }
  0x5a   : > { %s244_s16 = sand.u32 1, %s1340_s23   ;;  %s883_s17 = sshll.u32 %s1344_s24, 8 }
  0x5b   : > { %s869_s12 = sshll.u32 %s244_s16, 4  ;;  %s1551_s19 = scalar_lea.hbm %s1665_s0, %s883_s17 }
  0x5c   : > { %s248_s20 = scalar_lea.vmem [#allocation2], %s869_s12  ;;  %p1553_p11 = pnand %p1114_p6, %p40_p10 }
  0x5d   : > { %s256_s26 = sshll.u32 %s248_s20, 4  ;;  %s245_s10 = scalar_lea.sflag [#allocation3], %s244_s16  ;;  %s1557_s26 = int_to_ptr.vmem [resolvable:$true] %s256_s26 }
  0x5e   : > { %s1240_s11 = scalar_lea.hbm %s1551_s19, 256  ;;  %p1242_p9 = pneg %p1553_p11 }
  0x5f   : > { %p1241_p7 = scmp.ne.s32.totalorder %s1551_s19, %s1240_s11  ;;  %s1245_s17 = scalar_lea.hbm %s1665_s0, 512 }
  0x60   : > { %p1246_p1 = scmp.lt.u32.totalorder %s1551_s19, %s1665_s0  ;;  %p1247_p2 = scmp.lt.u32.totalorder %s1245_s17, %s1240_s11 }
  0x61   : > { %p1243_p12 = pnand %p1242_p9, %p1241_p7  ;;  %p1249_p8 = scmp.lt.u32.totalorder %s1240_s11, %s1551_s19 }
  0x62   : > { %p1248_p4 = por %p1247_p2, %p1246_p1 }
  0x63   : > { %p1244_p0 = pneg %p1243_p12 }
  0x64   : > { %p1250_p13 = por %p1249_p8, %p1248_p4 }
  0x66   : > { %p1251_p6 = pnand %p1250_p13, %p1244_p0 }
  0x68   : > { %1254 = shalt.err (!%p1251_p6)
}
  0x69   : > { %s1255_s16 = scalar_lea.vmem %s1557_s26, 256  ;;  %s1351_s9 = smov [#allocation2]  }
  0x6a   : > { %p1256_p10 = scmp.ne.s32.totalorder %s1557_s26, %s1255_s16  ;;  %s1260_s20 = sshll.u32 %s1351_s9, 4  ;;  %s1261_s20 = int_to_ptr.vmem [resolvable:$false] %s1260_s20 }
  0x6b   : > { %s1262_s8 = scalar_lea.vmem %s1261_s20, 512  ;;  %p1263_p12 = scmp.lt.s32.totalorder %s1557_s26, %s1261_s20 }
  0x6c   : > { %p1258_p3 = pnand %p1256_p10, %p1242_p9  ;;  %p1264_p1 = scmp.lt.s32.totalorder %s1262_s8, %s1255_s16 }
  0x6e   : > { %p1259_p7 = pneg %p1258_p3  ;;  %p1265_p2 = por %p1264_p1, %p1263_p12 }
  0x70   : > { %p1266_p4 = pnand %p1265_p2, %p1259_p7 }
  0x72   : > { %1269 = shalt.err (!%p1266_p4)
}
  0x73   : > { %1106 = dma.hbm_to_vmem [thread:$0]  (!%p1553_p11), %s1551_s19, 256, %s1557_s26, %s245_s10  }
  0x74   : > { %p1683_p0 = scmp.ne.s32.totalorder %s1677_s29, 0 }
  0x75   : > { %s1587_s11 = sand.u32 (!%p1683_p0), 1, %s1336_s22   ;;  %p1684_p9 = scmp.ne.s32.totalorder (!%p1683_p0), %s1675_s27, 0 }
  0x76   : > { %265 = sbr.rel (%p1683_p0) target bundleno = 863 (0x35f), region = 44  ;;  %s873_s13 = sshll.u32 (!%p1683_p0), %s1587_s11, 4 }
  0x77   : > { %s268_s17 = scalar_lea.sflag (!%p1683_p0), [#allocation3], %s1587_s11  ;;  %s1593_s12 = scalar_lea.vmem (!%p1683_p0), [#allocation2], %s873_s13 }
  0x7d   : > { %1315 = dma.done.wait (%p1684_p9), %s268_s17, 256  }
  0x7e   : > { %1317 = vsyncadd (%p1684_p9), %s268_s17, 4294967040  ;;  %p1685_p11 = scmp.eq.s32.totalorder %s1409_s25, 0 }
  0x80   : > { %1319 = dma.done.wait (%p1685_p11), [#allocation6], 16384   ;;  %p1686_p8 = pmov %p1685_p11 }
  0x82   : > { %1321 = vsyncadd (%p1686_p8), [#allocation6], 4294950912  ;;  %p1687_p13 = pmov %p1686_p8 }
  0x83   : > { %p1688_p6 = pmov %p1686_p8 }
  0x84   : > { %1323 = dma.done.wait (%p1687_p13), [#allocation9], 8192  }
  0x85   : > { %1325 = vsyncadd (%p1688_p6), [#allocation9], 4294959104  ;;  %v315_v0 = vld [vmem:[#allocation5 + $0x8] sm:$0xff]  ;;  %v317_v1 = vld [vmem:[#allocation5 + $0x18] sm:$0xff]  ;;  %s311_s7 = scalar_lea.vmem [#allocation10], %s873_s13  ;;  %s884_s30 = sshll.u32 %s1409_s25, 8 }
  0x86   : > { %v314_v2 = vld [vmem:[#allocation5] sm:$0xff]  ;;  %v885_v3 = vpack.c.bf16 %v317_v1, %v315_v0  ;;  %v316_v4 = vld [vmem:[#allocation5 + $0x10] sm:$0xff]  ;;  %v319_v5 = vld [vmem:[#allocation5 + $0x28] sm:$0xff]  ;;  %s764_s10 = sshll.u32 %s311_s7, 4  ;;  %s1623_s20 = scalar_lea.hbm %s1671_s6, %s884_s30  ;;  %s1618_s10 = int_to_ptr.vmem [resolvable:$true] %s764_s10 }
  0x87   : > { %v321_v6 = vld [vmem:[#allocation5 + $0x38] sm:$0xff]  ;;  %v887_v7 = vpack.c.bf16 %v316_v4, %v314_v2  ;;  %v318_v9 = vld [vmem:[#allocation5 + $0x20] sm:$0xff]  ;;  %v320_v10 = vld [vmem:[#allocation5 + $0x30] sm:$0xff]  ;;  %s750_s8 = scalar_lea.sflag [#allocation4], %s1587_s11  ;;  %s1270_s17 = scalar_lea.vmem %s1618_s10, 256 }
  0x88   : > { %v889_v8 = vpack.c.bf16 %v321_v6, %v319_v5  ;;  %v323_v11 = vld [vmem:[#allocation5 + $0x48] sm:$0xff]  ;;  %886 = vmatprep.subr.bf16.mxu0 %v885_v3  ;;  %v325_v12 = vld [vmem:[#allocation5 + $0x58] sm:$0xff]  ;;  %v891_v13 = vpack.c.bf16 %v320_v10, %v318_v9  ;;  %v322_v15 = vld [vmem:[#allocation5 + $0x40] sm:$0xff]  ;;  %p1271_p10 = scmp.ne.s32.totalorder %s1618_s10, %s1270_s17  ;;  %s1352_s25 = smov [#allocation10]  }
  0x89   : > { %888 = vmatpush1.bf16.msra.mxu0 %v887_v7  ;;  %v893_v14 = vpack.c.bf16 %v325_v12, %v323_v11  ;;  %v324_v16 = vld [vmem:[#allocation5 + $0x50] sm:$0xff]  ;;  %v327_v17 = vld [vmem:[#allocation5 + $0x68] sm:$0xff]  ;;  %v329_v18 = vld [vmem:[#allocation5 + $0x78] sm:$0xff]  ;;  %s1274_s13 = sshll.u32 %s1352_s25, 4  ;;  %s1275_s13 = int_to_ptr.vmem [resolvable:$false] %s1274_s13 }
  0x8a   : > { %890 = vmatprep.subr.bf16.mxu0 %v889_v8  ;;  %v895_v19 = vpack.c.bf16 %v324_v16, %v322_v15  ;;  %v897_v20 = vpack.c.bf16 %v329_v18, %v327_v17  ;;  %v326_v21 = vld [vmem:[#allocation5 + $0x60] sm:$0xff]  ;;  %v328_v22 = vld [vmem:[#allocation5 + $0x70] sm:$0xff]  ;;  %v331_v23 = vld [vmem:[#allocation5 + $0x88] sm:$0xff]  ;;  %p1272_p3 = pnand %p1271_p10, %p1542_p5  ;;  %p1277_p12 = scmp.lt.s32.totalorder %s1618_s10, %s1275_s13 }
  0x8b   : > { %v333_v24 = vld [vmem:[#allocation5 + $0x98] sm:$0xff]  ;;  %v899_v25 = vpack.c.bf16 %v328_v22, %v326_v21  ;;  %v330_v27 = vld [vmem:[#allocation5 + $0x80] sm:$0xff]  ;;  %v332_v28 = vld [vmem:[#allocation5 + $0x90] sm:$0xff] }
  0x8c   : > { %v901_v26 = vpack.c.bf16 %v333_v24, %v331_v23  ;;  %v335_v29 = vld [vmem:[#allocation5 + $0xa8] sm:$0xff]  ;;  %v337_v30 = vld [vmem:[#allocation5 + $0xb8] sm:$0xff]  ;;  %v903_v31 = vpack.c.bf16 %v332_v28, %v330_v27  ;;  %v334_v33 = vld [vmem:[#allocation5 + $0xa0] sm:$0xff]  ;;  %p1273_p7 = pneg %p1272_p3 }
  0x8d   : > { %892 = vmatpush1.bf16.msra.mxu0 %v891_v13  ;;  %v905_v32 = vpack.c.bf16 %v337_v30, %v335_v29  ;;  %v336_v34 = vld [vmem:[#allocation5 + $0xb0] sm:$0xff]  ;;  %v339_v35 = vld [vmem:[#allocation5 + $0xc8] sm:$0xff]  ;;  %v341_v36 = vld [vmem:[#allocation5 + $0xd8] sm:$0xff] }
  0x8e   : > { %894 = vmatprep.subr.bf16.mxu0 %v893_v14  ;;  %v907_v37 = vpack.c.bf16 %v336_v34, %v334_v33  ;;  %v338_v38 = vld [vmem:[#allocation5 + $0xc0] sm:$0xff]  ;;  %v340_v39 = vld [vmem:[#allocation5 + $0xd0] sm:$0xff]  ;;  %v909_v40 = vpack.c.bf16 %v341_v36, %v339_v35  ;;  %v343_v41 = vld [vmem:[#allocation5 + $0xe8] sm:$0xff] }
  0x8f   : > { %v345_v42 = vld [vmem:[#allocation5 + $0xf8] sm:$0xff]  ;;  %v464_v44 = vld [vmem:[#allocation7 + $0x8] sm:$0xff]  ;;  %v463_v46 = vld [vmem:[#allocation7] sm:$0xff]  ;;  %v911_v51 = vpack.c.bf16 %v340_v39, %v338_v38 }
  0x90   : > { %v313_v43 = vld [vmem:[%s1593_s12 + $0x8] sm:$0xff]  ;;  %v465_v48 = vld [vmem:[#allocation7 + $0x10] sm:$0xff]  ;;  %v467_v54 = vld [vmem:[#allocation7 + $0x20] sm:$0xff]  ;;  %v913_v57 = vpack.c.bf16 %v345_v42, %v343_v41 }
  0x91   : > { %896 = vmatpush1.bf16.msra.mxu0 %v895_v19  ;;  %454 = vmatprep.mubr.f32.mxu0 %v313_v43  ;;  %v466_v45 = vld [vmem:[#allocation7 + $0x18] sm:$0xff]  ;;  %v468_v49 = vld [vmem:[#allocation7 + $0x28] sm:$0xff]  ;;  %v951_v52 = vpack.c.bf16 %v465_v48, %v463_v46  ;;  %v469_v55 = vld [vmem:[#allocation7 + $0x30] sm:$0xff] }
  0x92   : > { %898 = vmatprep.subr.bf16.mxu0 %v897_v20  ;;  %v949_v47 = vpack.c.bf16 %v466_v45, %v464_v44  ;;  %v470_v50 = vld [vmem:[#allocation7 + $0x38] sm:$0xff]  ;;  %v472_v56 = vld [vmem:[#allocation7 + $0x48] sm:$0xff]  ;;  %v342_v58 = vld [vmem:[#allocation5 + $0xe0] sm:$0xff]  ;;  %v955_v63 = vpack.c.bf16 %v469_v55, %v467_v54 }
  0x93   : > { %v953_v53 = vpack.c.bf16 %v470_v50, %v468_v49  ;;  %v344_v59 = vld [vmem:[#allocation5 + $0xf0] sm:$0xff]  ;;  %v474_v60 = vld [vmem:[#allocation7 + $0x58] sm:$0xff]  ;;  %v347_v61 = vld [vmem:[#allocation5 + $0x108] sm:$0xff] }
  0x94   : > { %950 = vmatprep.subr.bf16.mxu1 %v949_v47  ;;  %v349_v62 = vld [vmem:[#allocation5 + $0x118] sm:$0xff]  ;;  %v957_v0 = vpack.c.bf16 %v474_v60, %v472_v56  ;;  %v471_v1 = vld [vmem:[#allocation7 + $0x40] sm:$0xff]  ;;  %v473_v2 = vld [vmem:[#allocation7 + $0x50] sm:$0xff]  ;;  %v915_v3 = vpack.c.bf16 %v344_v59, %v342_v58 }
  0x95   : > { %900 = vmatpush1.bf16.msra.mxu0 %v899_v25  ;;  %952 = vmatpush1.bf16.msra.mxu1 %v951_v52  ;;  %v476_v4 = vld [vmem:[#allocation7 + $0x68] sm:$0xff]  ;;  %v478_v5 = vld [vmem:[#allocation7 + $0x78] sm:$0xff]  ;;  %v917_v6 = vpack.c.bf16 %v349_v62, %v347_v61  ;;  %v346_v7 = vld [vmem:[#allocation5 + $0x100] sm:$0xff]  ;;  %v959_v11 = vpack.c.bf16 %v473_v2, %v471_v1 }
  0x96   : > { %902 = vmatprep.subr.bf16.mxu0 %v901_v26  ;;  %954 = vmatprep.subr.bf16.mxu1 %v953_v53  ;;  %v348_v8 = vld [vmem:[#allocation5 + $0x110] sm:$0xff]  ;;  %v351_v9 = vld [vmem:[#allocation5 + $0x128] sm:$0xff]  ;;  %v353_v10 = vld [vmem:[#allocation5 + $0x138] sm:$0xff]  ;;  %v961_v12 = vpack.c.bf16 %v478_v5, %v476_v4 }
  0x97   : > { %v475_v13 = vld [vmem:[#allocation7 + $0x60] sm:$0xff]  ;;  %v477_v14 = vld [vmem:[#allocation7 + $0x70] sm:$0xff]  ;;  %v919_v15 = vpack.c.bf16 %v348_v8, %v346_v7  ;;  %v480_v16 = vld [vmem:[#allocation7 + $0x88] sm:$0xff]  ;;  %v921_v18 = vpack.c.bf16 %v353_v10, %v351_v9 }
  0x98   : > { %v482_v17 = vld [vmem:[#allocation7 + $0x98] sm:$0xff]  ;;  %v350_v19 = vld [vmem:[#allocation5 + $0x120] sm:$0xff]  ;;  %v352_v20 = vld [vmem:[#allocation5 + $0x130] sm:$0xff]  ;;  %v963_v23 = vpack.c.bf16 %v477_v14, %v475_v13 }
  0x99   : > { %904 = vmatpush1.bf16.msra.mxu0 %v903_v31  ;;  %956 = vmatpush1.bf16.msra.mxu1 %v955_v63  ;;  %v355_v21 = vld [vmem:[#allocation5 + $0x148] sm:$0xff]  ;;  %v357_v22 = vld [vmem:[#allocation5 + $0x158] sm:$0xff]  ;;  %v965_v24 = vpack.c.bf16 %v482_v17, %v480_v16  ;;  %v479_v25 = vld [vmem:[#allocation7 + $0x80] sm:$0xff]  ;;  %v923_v27 = vpack.c.bf16 %v352_v20, %v350_v19 }
  0x9a   : > { %906 = vmatprep.subr.bf16.mxu0 %v905_v32  ;;  %958 = vmatprep.subr.bf16.mxu1 %v957_v0  ;;  %v481_v26 = vld [vmem:[#allocation7 + $0x90] sm:$0xff]  ;;  %v484_v28 = vld [vmem:[#allocation7 + $0xa8] sm:$0xff]  ;;  %v486_v29 = vld [vmem:[#allocation7 + $0xb8] sm:$0xff]  ;;  %v925_v30 = vpack.c.bf16 %v357_v22, %v355_v21 }
  0x9b   : > { %v354_v31 = vld [vmem:[#allocation5 + $0x140] sm:$0xff]  ;;  %v356_v32 = vld [vmem:[#allocation5 + $0x150] sm:$0xff]  ;;  %v359_v33 = vld [vmem:[#allocation5 + $0x168] sm:$0xff]  ;;  %v967_v35 = vpack.c.bf16 %v481_v26, %v479_v25  ;;  %v969_v36 = vpack.c.bf16 %v486_v29, %v484_v28 }
  0x9c   : > { %v361_v34 = vld [vmem:[#allocation5 + $0x178] sm:$0xff]  ;;  %v485_v38 = vld [vmem:[#allocation7 + $0xb0] sm:$0xff]  ;;  %v927_v39 = vpack.c.bf16 %v356_v32, %v354_v31  ;;  %v358_v43 = vld [vmem:[#allocation5 + $0x160] sm:$0xff] }
  0x9d   : > { %908 = vmatpush1.bf16.msra.mxu0 %v907_v37  ;;  %960 = vmatpush1.bf16.msra.mxu1 %v959_v11  ;;  %v483_v37 = vld [vmem:[#allocation7 + $0xa0] sm:$0xff]  ;;  %v490_v41 = vld [vmem:[#allocation7 + $0xd8] sm:$0xff]  ;;  %v929_v42 = vpack.c.bf16 %v361_v34, %v359_v33  ;;  %v360_v44 = vld [vmem:[#allocation5 + $0x170] sm:$0xff] }
  0x9e   : > { %910 = vmatprep.subr.bf16.mxu0 %v909_v40  ;;  %962 = vmatprep.subr.bf16.mxu1 %v961_v12  ;;  %v488_v40 = vld [vmem:[#allocation7 + $0xc8] sm:$0xff]  ;;  %v365_v46 = vld [vmem:[#allocation5 + $0x198] sm:$0xff]  ;;  %v971_v47 = vpack.c.bf16 %v485_v38, %v483_v37  ;;  %v487_v49 = vld [vmem:[#allocation7 + $0xc0] sm:$0xff] }
  0x9f   : > { %v363_v45 = vld [vmem:[#allocation5 + $0x188] sm:$0xff]  ;;  %v973_v48 = vpack.c.bf16 %v490_v41, %v488_v40  ;;  %v489_v50 = vld [vmem:[#allocation7 + $0xd0] sm:$0xff]  ;;  %v494_v53 = vld [vmem:[#allocation7 + $0xf8] sm:$0xff] }
  0xa0   : > { %v492_v52 = vld [vmem:[#allocation7 + $0xe8] sm:$0xff]  ;;  %v933_v54 = vpack.c.bf16 %v365_v46, %v363_v45  ;;  %v362_v55 = vld [vmem:[#allocation5 + $0x180] sm:$0xff]  ;;  %v364_v56 = vld [vmem:[#allocation5 + $0x190] sm:$0xff]  ;;  %v975_v59 = vpack.c.bf16 %v489_v50, %v487_v49 }
  0xa1   : > { %912 = vmatpush1.bf16.msra.mxu0 %v911_v51  ;;  %964 = vmatpush1.bf16.msra.mxu1 %v963_v23  ;;  %v931_v51 = vpack.c.bf16 %v360_v44, %v358_v43  ;;  %v369_v58 = vld [vmem:[#allocation5 + $0x1b8] sm:$0xff]  ;;  %v977_v60 = vpack.c.bf16 %v494_v53, %v492_v52  ;;  %v491_v61 = vld [vmem:[#allocation7 + $0xe0] sm:$0xff]  ;;  %v493_v62 = vld [vmem:[#allocation7 + $0xf0] sm:$0xff]  ;;  %v935_v63 = vpack.c.bf16 %v364_v56, %v362_v55 }
  0xa2   : > { %914 = vmatprep.subr.bf16.mxu0 %v913_v57  ;;  %966 = vmatprep.subr.bf16.mxu1 %v965_v24  ;;  %v367_v57 = vld [vmem:[#allocation5 + $0x1a8] sm:$0xff]  ;;  %v498_v1 = vld [vmem:[#allocation7 + $0x118] sm:$0xff]  ;;  %v368_v4 = vld [vmem:[#allocation5 + $0x1b0] sm:$0xff]  ;;  %v979_v7 = vpack.c.bf16 %v493_v62, %v491_v61 }
  0xa3   : > { %v496_v0 = vld [vmem:[#allocation7 + $0x108] sm:$0xff]  ;;  %v937_v2 = vpack.c.bf16 %v369_v58, %v367_v57  ;;  %v495_v9 = vld [vmem:[#allocation7 + $0x100] sm:$0xff]  ;;  %v497_v10 = vld [vmem:[#allocation7 + $0x110] sm:$0xff] }
  0xa4   : > { %v371_v5 = vld [vmem:[#allocation5 + $0x1c8] sm:$0xff]  ;;  %v981_v8 = vpack.c.bf16 %v498_v1, %v496_v0  ;;  %v502_v13 = vld [vmem:[#allocation7 + $0x138] sm:$0xff]  ;;  %v372_v16 = vld [vmem:[#allocation5 + $0x1d0] sm:$0xff]  ;;  %v983_v19 = vpack.c.bf16 %v497_v10, %v495_v9 }
  0xa5   : > { %916 = vmatpush1.bf16.msra.mxu0 %v915_v3  ;;  %968 = vmatpush1.bf16.msra.mxu1 %v967_v35  ;;  %v366_v3 = vld [vmem:[#allocation5 + $0x1a0] sm:$0xff]  ;;  %v500_v12 = vld [vmem:[#allocation7 + $0x128] sm:$0xff]  ;;  %v501_v22 = vld [vmem:[#allocation7 + $0x130] sm:$0xff] }
  0xa6   : > { %918 = vmatprep.subr.bf16.mxu0 %v917_v6  ;;  %970 = vmatprep.subr.bf16.mxu1 %v969_v36  ;;  %v373_v6 = vld [vmem:[#allocation5 + $0x1d8] sm:$0xff]  ;;  %v939_v11 = vpack.c.bf16 %v368_v4, %v366_v3  ;;  %v375_v17 = vld [vmem:[#allocation5 + $0x1e8] sm:$0xff]  ;;  %v985_v20 = vpack.c.bf16 %v502_v13, %v500_v12  ;;  %v499_v21 = vld [vmem:[#allocation7 + $0x120] sm:$0xff] }
  0xa7   : > { %v941_v14 = vpack.c.bf16 %v373_v6, %v371_v5  ;;  %v504_v24 = vld [vmem:[#allocation7 + $0x148] sm:$0xff]  ;;  %v506_v25 = vld [vmem:[#allocation7 + $0x158] sm:$0xff]  ;;  %v376_v28 = vld [vmem:[#allocation5 + $0x1f0] sm:$0xff]  ;;  %v987_v29 = vpack.c.bf16 %v501_v22, %v499_v21 }
  0xa8   : > { %v503_v31 = vld [vmem:[#allocation7 + $0x140] sm:$0xff]  ;;  %v505_v32 = vld [vmem:[#allocation7 + $0x150] sm:$0xff]  ;;  %v508_v34 = vld [vmem:[#allocation7 + $0x168] sm:$0xff] }
  0xa9   : > { %920 = vmatpush1.bf16.msra.mxu0 %v919_v15  ;;  %972 = vmatpush1.bf16.msra.mxu1 %v971_v47  ;;  %v370_v15 = vld [vmem:[#allocation5 + $0x1c0] sm:$0xff]  ;;  %v510_v35 = vld [vmem:[#allocation7 + $0x178] sm:$0xff]  ;;  %v991_v36 = vpack.c.bf16 %v505_v32, %v503_v31  ;;  %v512_v41 = vld [vmem:[#allocation7 + $0x188] sm:$0xff] }
  0xaa   : > { %922 = vmatprep.subr.bf16.mxu0 %v921_v18  ;;  %974 = vmatprep.subr.bf16.mxu1 %v973_v48  ;;  %v377_v18 = vld [vmem:[#allocation5 + $0x1f8] sm:$0xff]  ;;  %v943_v23 = vpack.c.bf16 %v372_v16, %v370_v15  ;;  %v993_v37 = vpack.c.bf16 %v510_v35, %v508_v34  ;;  %v507_v38 = vld [vmem:[#allocation7 + $0x160] sm:$0xff]  ;;  %v513_v46 = vld [vmem:[#allocation7 + $0x190] sm:$0xff] }
  0xab   : > { %v945_v26 = vpack.c.bf16 %v377_v18, %v375_v17  ;;  %v312_v40 = vld [vmem:[%s1593_s12] sm:$0xff]  ;;  %v516_v47 = vld [vmem:[#allocation7 + $0x1a8] sm:$0xff]  ;;  %v518_v48 = vld [vmem:[#allocation7 + $0x1b8] sm:$0xff]  ;;  %s1276_s12 = scalar_lea.vmem %s1275_s13, 512 }
  0xac   : > { %v511_v45 = vld [vmem:[#allocation7 + $0x180] sm:$0xff]  ;;  %v1001_v50 = vpack.c.bf16 %v518_v48, %v516_v47  ;;  %v517_v52 = vld [vmem:[#allocation7 + $0x1b0] sm:$0xff]  ;;  %v520_v53 = vld [vmem:[#allocation7 + $0x1c8] sm:$0xff]  ;;  %p1278_p1 = scmp.lt.s32.totalorder %s1276_s12, %s1270_s17 }
  0xad   : > { %924 = vmatpush1.bf16.msra.mxu0 %v923_v27  ;;  %976 = vmatpush1.bf16.msra.mxu1 %v975_v59  ;;  %v374_v27 = vld [vmem:[#allocation5 + $0x1e0] sm:$0xff]  ;;  %v999_v49 = vpack.c.bf16 %v513_v46, %v511_v45  ;;  %v521_v58 = vld [vmem:[#allocation7 + $0x1d0] sm:$0xff]  ;;  %v526_v61 = vld [vmem:[#allocation7 + $0x1f8] sm:$0xff] }
  0xae   : > { %926 = vmatprep.subr.bf16.mxu0 %v925_v30  ;;  %978 = vmatprep.subr.bf16.mxu1 %v977_v60  ;;  %v989_v30 = vpack.c.bf16 %v506_v25, %v504_v24  ;;  %v947_v33 = vpack.c.bf16 %v376_v28, %v374_v27  ;;  %v519_v57 = vld [vmem:[#allocation7 + $0x1c0] sm:$0xff]  ;;  %v524_v60 = vld [vmem:[#allocation7 + $0x1e8] sm:$0xff]  ;;  %v525_v0 = vld [vmem:[#allocation7 + $0x1f0] sm:$0xff]  ;;  %p1279_p2 = por %p1278_p1, %p1277_p12 }
  0xaf   : > { %v1007_v59 = vpack.c.bf16 %v521_v58, %v519_v57  ;;  %v1009_v62 = vpack.c.bf16 %v526_v61, %v524_v60  ;;  %v615_v3 = vld [vmem:[#allocation8 + $0x18] sm:$0xff]  ;;  %v612_v4 = vld [vmem:[#allocation8] sm:$0xff]  ;;  %v614_v6 = vld [vmem:[#allocation8 + $0x10] sm:$0xff] }
  0xb0   : > { %v1015_v9 = vpack.c.bf16 %v614_v6, %v612_v4  ;;  %v618_v12 = vld [vmem:[#allocation8 + $0x30] sm:$0xff]  ;;  %v621_v13 = vld [vmem:[#allocation8 + $0x48] sm:$0xff]  ;;  %v620_v17 = vld [vmem:[#allocation8 + $0x40] sm:$0xff]  ;;  %p1280_p4 = pnand %p1279_p2, %p1273_p7 }
  0xb1   : > { %928 = vmatpush1.bf16.msra.mxu0 %v927_v39  ;;  %980 = vmatpush1.bf16.msra.mxu1 %v979_v7  ;;  %v509_v39 = vld [vmem:[#allocation7 + $0x170] sm:$0xff]  ;;  %v617_v7 = vld [vmem:[#allocation8 + $0x28] sm:$0xff]  ;;  %v635_v32 = vld [vmem:[#allocation8 + $0xb8] sm:$0xff] }
  0xb2   : > { %930 = vmatprep.subr.bf16.mxu0 %v929_v42  ;;  %982 = vmatprep.subr.bf16.mxu1 %v981_v8  ;;  %v514_v42 = vld [vmem:[#allocation7 + $0x198] sm:$0xff]  ;;  %v995_v43 = vpack.c.bf16 %v509_v39, %v507_v38  ;;  %v622_v18 = vld [vmem:[#allocation8 + $0x50] sm:$0xff]  ;;  %v629_v25 = vld [vmem:[#allocation8 + $0x88] sm:$0xff] }
  0xb3   : > { %v997_v44 = vpack.c.bf16 %v514_v42, %v512_v41  ;;  %v619_v8 = vld [vmem:[#allocation8 + $0x38] sm:$0xff]  ;;  %v1023_v21 = vpack.c.bf16 %v622_v18, %v620_v17  ;;  %v626_v24 = vld [vmem:[#allocation8 + $0x70] sm:$0xff]  ;;  %v633_v31 = vld [vmem:[#allocation8 + $0xa8] sm:$0xff] }
  0xb4   : > { %v1017_v10 = vpack.c.bf16 %v619_v8, %v617_v7  ;;  %v1033_v34 = vpack.c.bf16 %v635_v32, %v633_v31  ;;  %v632_v35 = vld [vmem:[#allocation8 + $0xa0] sm:$0xff]  ;;  %v639_v38 = vld [vmem:[#allocation8 + $0xd8] sm:$0xff]  ;;  %v638_v42 = vld [vmem:[#allocation8 + $0xd0] sm:$0xff] }
  0xb5   : > { %932 = vmatpush1.bf16.msra.mxu0 %v931_v51  ;;  %984 = vmatpush1.bf16.msra.mxu1 %v983_v19  ;;  %v515_v51 = vld [vmem:[#allocation7 + $0x1a0] sm:$0xff]  ;;  %v625_v19 = vld [vmem:[#allocation8 + $0x68] sm:$0xff]  ;;  %v642_v48 = vld [vmem:[#allocation8 + $0xf0] sm:$0xff] }
  0xb6   : > { %934 = vmatprep.subr.bf16.mxu0 %v933_v54  ;;  %986 = vmatprep.subr.bf16.mxu1 %v985_v20  ;;  %v522_v54 = vld [vmem:[#allocation7 + $0x1d8] sm:$0xff]  ;;  %v1003_v55 = vpack.c.bf16 %v517_v52, %v515_v51  ;;  %v636_v41 = vld [vmem:[#allocation8 + $0xc0] sm:$0xff]  ;;  %v650_v60 = vld [vmem:[#allocation8 + $0x130] sm:$0xff] }
  0xb7   : > { %v1005_v56 = vpack.c.bf16 %v522_v54, %v520_v53  ;;  %v627_v20 = vld [vmem:[#allocation8 + $0x78] sm:$0xff]  ;;  %v1039_v45 = vpack.c.bf16 %v638_v42, %v636_v41  ;;  %v640_v47 = vld [vmem:[#allocation8 + $0xe0] sm:$0xff]  ;;  %v646_v54 = vld [vmem:[#allocation8 + $0x110] sm:$0xff] }
  0xb8   : > { %v1025_v22 = vpack.c.bf16 %v627_v20, %v625_v19  ;;  %v1043_v51 = vpack.c.bf16 %v642_v48, %v640_v47  ;;  %v644_v53 = vld [vmem:[#allocation8 + $0x100] sm:$0xff]  ;;  %v653_v61 = vld [vmem:[#allocation8 + $0x148] sm:$0xff]  ;;  %v659_v4 = vld [vmem:[#allocation8 + $0x178] sm:$0xff] }
  0xb9   : > { %936 = vmatpush1.bf16.msra.mxu0 %v935_v63  ;;  %988 = vmatpush1.bf16.msra.mxu1 %v987_v29  ;;  %v523_v63 = vld [vmem:[#allocation7 + $0x1e0] sm:$0xff]  ;;  %v1047_v57 = vpack.c.bf16 %v646_v54, %v644_v53  ;;  %v658_v8 = vld [vmem:[#allocation8 + $0x170] sm:$0xff]  ;;  %v673_v41 = vld [vmem:[#allocation8 + $0x1e8] sm:$0xff] }
  0xba   : > { %938 = vmatprep.subr.bf16.mxu0 %v937_v2  ;;  %990 = vmatprep.subr.bf16.mxu1 %v989_v30  ;;  %v1011_v1 = vpack.c.bf16 %v525_v0, %v523_v63  ;;  %v613_v2 = vld [vmem:[#allocation8 + $0x8] sm:$0xff]  ;;  %v628_v29 = vld [vmem:[#allocation8 + $0x80] sm:$0xff]  ;;  %v630_v30 = vld [vmem:[#allocation8 + $0x90] sm:$0xff] }
  0xbb   : > { %v1013_v5 = vpack.c.bf16 %v615_v3, %v613_v2  ;;  %v654_v2 = vld [vmem:[#allocation8 + $0x150] sm:$0xff]  ;;  %v657_v3 = vld [vmem:[#allocation8 + $0x168] sm:$0xff]  ;;  %v656_v7 = vld [vmem:[#allocation8 + $0x160] sm:$0xff] }
  0xbc   : > { %v1057_v6 = vpack.c.bf16 %v659_v4, %v657_v3  ;;  %v664_v19 = vld [vmem:[#allocation8 + $0x1a0] sm:$0xff]  ;;  %v666_v20 = vld [vmem:[#allocation8 + $0x1b0] sm:$0xff]  ;;  %v675_v42 = vld [vmem:[#allocation8 + $0x1f8] sm:$0xff] }
  0xbd   : > { %940 = vmatpush1.bf16.msra.mxu0 %v939_v11  ;;  %992 = vmatpush1.bf16.msra.mxu1 %v991_v36  ;;  %v616_v11 = vld [vmem:[#allocation8 + $0x20] sm:$0xff]  ;;  %v634_v36 = vld [vmem:[#allocation8 + $0xb0] sm:$0xff] }
  0xbe   : > { %942 = vmatprep.subr.bf16.mxu0 %v941_v14  ;;  %994 = vmatprep.subr.bf16.mxu1 %v993_v37  ;;  %v623_v14 = vld [vmem:[#allocation8 + $0x58] sm:$0xff]  ;;  %v1019_v15 = vpack.c.bf16 %v618_v12, %v616_v11  ;;  %v637_v37 = vld [vmem:[#allocation8 + $0xc8] sm:$0xff]  ;;  %v1035_v39 = vpack.c.bf16 %v634_v36, %v632_v35  ;;  %v1059_v11 = vpack.c.bf16 %v658_v8, %v656_v7  ;;  %v527_v47 = vld [vmem:[%s1669_s4] sm:$0x3] }
  0xbf   : > { %v1021_v16 = vpack.c.bf16 %v623_v14, %v621_v13  ;;  %v660_v13 = vld [vmem:[#allocation8 + $0x180] sm:$0xff]  ;;  %v662_v14 = vld [vmem:[#allocation8 + $0x190] sm:$0xff] }
  0xc0   : > { %v1063_v17 = vpack.c.bf16 %v662_v14, %v660_v13 }
  0xc1   : > { %944 = vmatpush1.bf16.msra.mxu0 %v943_v23  ;;  %996 = vmatpush1.bf16.msra.mxu1 %v995_v43  ;;  %v624_v23 = vld [vmem:[#allocation8 + $0x60] sm:$0xff]  ;;  %v641_v43 = vld [vmem:[#allocation8 + $0xe8] sm:$0xff] }
  0xc2   : > { %946 = vmatprep.subr.bf16.mxu0 %v945_v26  ;;  %998 = vmatprep.subr.bf16.mxu1 %v997_v44  ;;  %v631_v26 = vld [vmem:[#allocation8 + $0x98] sm:$0xff]  ;;  %v1027_v27 = vpack.c.bf16 %v626_v24, %v624_v23  ;;  %v1067_v23 = vpack.c.bf16 %v666_v20, %v664_v19 }
  0xc3   : > { %v1029_v28 = vpack.c.bf16 %v631_v26, %v629_v25  ;;  %v643_v44 = vld [vmem:[#allocation8 + $0xf8] sm:$0xff]  ;;  %v380_v25 = vlaneseq }
  0xc4   : > { %v1041_v46 = vpack.c.bf16 %v643_v44, %v641_v43  ;;  %v1073_v43 = vpack.c.bf16 %v675_v42, %v673_v41  ;;  %v672_v44 = vld [vmem:[#allocation8 + $0x1e0] sm:$0xff] }
  0xc5   : > { %948 = vmatpush1.bf16.msra.mxu0 %v947_v33  ;;  %1000 = vmatpush1.bf16.msra.mxu1 %v999_v49  ;;  %v1031_v33 = vpack.c.bf16 %v630_v30, %v628_v29  ;;  %v645_v49 = vld [vmem:[#allocation8 + $0x108] sm:$0xff]  ;;  %v381_v26 = vshrl.u32 %v380_v25, 7 }
  0xc6   : > { %1002 = vmatprep.subr.bf16.mxu1 %v1001_v50  ;;  %1014 = vmatprep.subr.bf16.mxu0 %v1013_v5  ;;  %v647_v50 = vld [vmem:[#allocation8 + $0x118] sm:$0xff] }
  0xc7   : > { %v1045_v52 = vpack.c.bf16 %v647_v50, %v645_v49  ;;  %v386_v29 = vsub.s32 1, %v381_v26 }
  0xc8   : > { %455 = vmatmul.mubr.f32.vlgmr.msra.gmra.mrb[0].mxu0 %v312_v40  ;;  %v1037_v40 = vpack.c.bf16 %v639_v38, %v637_v37  ;;  %v668_v38 = vld [vmem:[#allocation8 + $0x1c0] sm:$0xff] }
  0xc9   : > { %1004 = vmatpush1.bf16.msra.mxu1 %v1003_v55  ;;  %1016 = vmatpush1.bf16.msra.mxu0 %v1015_v9  ;;  %v649_v55 = vld [vmem:[#allocation8 + $0x128] sm:$0xff]  ;;  %v536_v49 = vrot.slane %v527_v47, %v386_v29 }
  0xca   : > { %1006 = vmatprep.subr.bf16.mxu1 %v1005_v56  ;;  %1018 = vmatprep.subr.bf16.mxu0 %v1017_v10  ;;  %v651_v56 = vld [vmem:[#allocation8 + $0x138] sm:$0xff]  ;;  %v661_v9 = vld [vmem:[#allocation8 + $0x188] sm:$0xff] }
  0xcb   : > { %v1049_v58 = vpack.c.bf16 %v651_v56, %v649_v55  ;;  %v663_v10 = vld [vmem:[#allocation8 + $0x198] sm:$0xff] }
  0xcc   : > { %v1061_v12 = vpack.c.bf16 %v663_v10, %v661_v9 }
  0xcd   : > { %1008 = vmatpush1.bf16.msra.mxu1 %v1007_v59  ;;  %1020 = vmatpush1.bf16.msra.mxu0 %v1019_v15  ;;  %v648_v59 = vld [vmem:[#allocation8 + $0x120] sm:$0xff]  ;;  %v665_v15 = vld [vmem:[#allocation8 + $0x1a8] sm:$0xff] }
  0xce   : > { %1010 = vmatprep.subr.bf16.mxu1 %v1009_v62  ;;  %1022 = vmatprep.subr.bf16.mxu0 %v1021_v16  ;;  %v655_v62 = vld [vmem:[#allocation8 + $0x158] sm:$0xff]  ;;  %v1051_v63 = vpack.c.bf16 %v650_v60, %v648_v59 }
  0xcf   : > { %v1053_v0 = vpack.c.bf16 %v655_v62, %v653_v61  ;;  %v667_v16 = vld [vmem:[#allocation8 + $0x1b8] sm:$0xff] }
  0xd0   : > { %v1065_v18 = vpack.c.bf16 %v667_v16, %v665_v15 }
  0xd1   : > { %1012 = vmatpush1.bf16.msra.mxu1 %v1011_v1  ;;  %1024 = vmatpush1.bf16.msra.mxu0 %v1023_v21  ;;  %v652_v1 = vld [vmem:[#allocation8 + $0x140] sm:$0xff]  ;;  %v669_v21 = vld [vmem:[#allocation8 + $0x1c8] sm:$0xff] }
  0xd2   : > { %1026 = vmatprep.subr.bf16.mxu0 %v1025_v22  ;;  %v1055_v5 = vpack.c.bf16 %v654_v2, %v652_v1  ;;  %v671_v22 = vld [vmem:[#allocation8 + $0x1d8] sm:$0xff] }
  0xd3   : > { %v1069_v24 = vpack.c.bf16 %v671_v22, %v669_v21 }
  0xd5   : > { %1028 = vmatpush1.bf16.msra.mxu0 %v1027_v27  ;;  %v382_v27 = vsub.s32 0, %v381_v26 }
  0xd6   : > { %1030 = vmatprep.subr.bf16.mxu0 %v1029_v28  ;;  %v378_v28 = vld [vmem:[%s1667_s2] sm:$0x3] }
  0xd7   : > { %v383_v30 = vrot.slane %v378_v28, %v382_v27  ;;  %v387_v31 = vrot.slane %v378_v28, %v386_v29  ;;  %v532_v48 = vrot.slane %v527_v47, %v382_v27 }
  0xd9   : > { %1032 = vmatpush1.bf16.msra.mxu0 %v1031_v33 }
  0xda   : > { %1034 = vmatprep.subr.bf16.mxu0 %v1033_v34 }
  0xdd   : > { %1036 = vmatpush1.bf16.msra.mxu0 %v1035_v39  ;;  %v670_v39 = vld [vmem:[#allocation8 + $0x1d0] sm:$0xff] }
  0xde   : > { %1038 = vmatprep.subr.bf16.mxu0 %v1037_v40  ;;  %v1071_v40 = vpack.c.bf16 %v670_v39, %v668_v38 }
  0xe1   : > { %1040 = vmatpush1.bf16.msra.mxu0 %v1039_v45  ;;  %v674_v45 = vld [vmem:[#allocation8 + $0x1f0] sm:$0xff] }
  0xe2   : > { %1042 = vmatprep.subr.bf16.mxu0 %v1041_v46  ;;  %v1075_v46 = vpack.c.bf16 %v674_v45, %v672_v44 }
  0xe5   : > { %1044 = vmatpush1.bf16.msra.mxu0 %v1043_v51 }
  0xe6   : > { %1046 = vmatprep.subr.bf16.mxu0 %v1045_v52 }
  0xe9   : > { %1048 = vmatpush1.bf16.msra.mxu0 %v1047_v57 }
  0xea   : > { %1050 = vmatprep.subr.bf16.mxu0 %v1049_v58 }
  0xed   : > { %1052 = vmatpush1.bf16.msra.mxu0 %v1051_v63 }
  0xee   : > { %1054 = vmatprep.subr.bf16.mxu0 %v1053_v0 }
  0xf1   : > { %1056 = vmatpush1.bf16.msra.mxu0 %v1055_v5 }
  0xf2   : > { %1058 = vmatprep.subr.bf16.mxu0 %v1057_v6 }
  0xf5   : > { %1060 = vmatpush1.bf16.msra.mxu0 %v1059_v11 }
  0xf6   : > { %1062 = vmatprep.subr.bf16.mxu0 %v1061_v12 }
  0xf9   : > { %1064 = vmatpush1.bf16.msra.mxu0 %v1063_v17 }
  0xfa   : > { %1066 = vmatprep.subr.bf16.mxu0 %v1065_v18 }
  0xfd   : > { %1068 = vmatpush1.bf16.msra.mxu0 %v1067_v23 }
  0xfe   : > { %1070 = vmatprep.subr.bf16.mxu0 %v1069_v24 }
 0x101   : > { %1072 = vmatpush1.bf16.msra.mxu0 %v1071_v40 }
 0x102   : > { %1074 = vmatprep.subr.bf16.mxu0 %v1073_v43 }
 0x105   : > { %1076 = vmatpush1.bf16.msra.mxu0 %v1075_v46 }
 0x19b   : > { %v456_v32 = vpop.f32.mrb[0].mxu0 }
 0x19c   : > { %v457_v33 = vadd.f32 %v456_v32, %v383_v30  ;;  %v458_v34 = vpop.f32.mrb[1].mxu0 }
 0x19d   : > { %v459_v35 = vadd.f32 %v458_v34, %v387_v31 }
 0x19e   : > { %v461_v37 = vmax.f32 %v457_v33, 0.0 }
 0x19f   : > { %v462_v36 = vmax.f32 %v459_v35, 0.0 }
 0x1a1   : > { %603 = vmatprep.mubr.f32.mxu1 %v462_v36 }
 0x1a2   : > { %604 = vmatmul.mubr.f32.vlgmr.msra.gmra.mrb[0].mxu1 %v461_v37 }
 0x275   : > { %v605_v50 = vpop.f32.mrb[0].mxu1 }
 0x276   : > { %v606_v51 = vadd.f32 %v605_v50, %v532_v48  ;;  %v607_v52 = vpop.f32.mrb[1].mxu1 }
 0x277   : > { %v608_v53 = vadd.f32 %v607_v52, %v536_v49 }
 0x278   : > { %v610_v55 = vmax.f32 %v606_v51, 0.0 }
 0x279   : > { %v611_v54 = vmax.f32 %v608_v53, 0.0 }
 0x27b   : > { %740 = vmatprep.mubr.f32.mxu0 %v611_v54 }
 0x27c   : > { %741 = vmatmul.mubr.f32.vlgmr.msra.gmra.mrb[2].mxu0 %v610_v55 }
 0x34f   : > { %v742_v56 = vpop.f32.mrb[2].mxu0 }
 0x350   : > { %747 = vst [vmem:[%s311_s7] sm:$0xff] %v742_v56  ;;  %v744_v57 = vpop.f32.mrb[3].mxu0 }
 0x351   : > { %748 = vst [vmem:[%s311_s7 + $0x8] sm:$0xff] %v744_v57 }
 0x352   : > { %1283 = shalt.err (!%p1280_p4)
}
 0x353   : > { %s1284_s11 = scalar_lea.hbm %s1623_s20, 256  ;;  %s1288_s19 = scalar_lea.hbm %s1671_s6, 512 }
 0x354   : > { %p1285_p0 = scmp.ne.s32.totalorder %s1623_s20, %s1284_s11  ;;  %p1289_p8 = scmp.lt.u32.totalorder %s1623_s20, %s1671_s6 }
 0x355   : > { %p1290_p13 = scmp.lt.u32.totalorder %s1288_s19, %s1284_s11  ;;  %p1292_p10 = scmp.lt.u32.totalorder %s1284_s11, %s1623_s20 }
 0x356   : > { %p1286_p9 = pnand %p1285_p0, %p1542_p5 }
 0x357   : > { %p1291_p6 = por %p1290_p13, %p1289_p8 }
 0x358   : > { %p1287_p11 = pneg %p1286_p9 }
 0x359   : > { %p1293_p3 = por %p1292_p10, %p1291_p6 }
 0x35b   : > { %p1294_p7 = pnand %p1293_p3, %p1287_p11 }
 0x35d   : > { %1297 = shalt.err (!%p1294_p7)
}
 0x35e   : > { %1091 = dma.vmem_to_hbm [thread:$0]  (%p1542_p5), %s1618_s10, 256, %s1623_s20, %s750_s8  }
 0x35f PF: > { %s776_s30 = sand.u32 1, %s1332_s21   ;;  %p1689_p12 = scmp.ne.s32.totalorder %s1676_s28, 0 }
 0x360   : > { %p1690_p1 = scmp.ge.s32.totalorder %s1344_s24, 2  ;;  %s777_s16 = scalar_lea.sflag [#allocation4], %s776_s30 }
 0x362   : > { %p1108_p2 = pnand %p1690_p1, %p1689_p12 }
 0x364   : > { %1327 = dma.done.wait (!%p1108_p2), %s777_s16, 256  }
 0x365   : > { %1329 = vsyncadd (!%p1108_p2), %s777_s16, 4294967040  ;;  %p21_p4 = scmp.ge.s32.totalorder %s1528_s18, 4   ;;  %s1691_s21 = smov %s1336_s22 }
 0x366   : > { %s1692_s22 = smov %s1340_s23  ;;  %s1693_s23 = smov %s1538_s14 }
 0x367   : > { %s1694_s24 = smov %s1528_s18  ;;  %23 = sbr.rel (!%p21_p4) target bundleno = 7 (0x7), region = 101 }
 0x36e   :  { %782 = vsyncpa [#allocation3], 1 }
 0x36f   :  { %784 = vsyncpa [#allocation3 + $0x1], 1 }
 0x370   :  { %785 = vsyncpa [#allocation6], 1 }
 0x371   :  { %786 = vsyncpa [#allocation9], 1 }
 0x372   :  { %787 = vsyncpa [#allocation4], 1 }
 0x373   :  { %789 = vsyncpa [#allocation4 + $0x1], 1 }

</bundles_post_ra>
